<compile_context>
chip_gen: v7x
topology: tpu7x:2x2x1
jax: 0.10.0
libtpu: 0.0.40
codegen_flags: <defaults>
</compile_context>

<pallas_src>
import functools

import jax
import jax.numpy as jnp
from jax import lax
from jax.experimental import pallas as pl
from jax.experimental.pallas import tpu as pltpu

_LANE = 128
_VMEM_TILE_CAP = 40 * 1024 * 1024   # keep kernel buffers well under v7x's 64 MiB per TC


def _round_up(v, m):
    return (v + m - 1) // m * m


def _rel_graph_conv_kernel(adj_ref, x_ref, w_ref, loopw_ref, bias_ref,
                           o_ref, agg_ref, *, tile_n, deg_col, apply_relu):
    i = pl.program_id(0)        # dst-node tile
    r = pl.program_id(1)        # relation
    k = pl.program_id(2)        # src-node tile (reduction, innermost)
    nr = pl.num_programs(1)
    ns = pl.num_programs(2)

    # ---- first step of this dst tile: bias + self-loop (x_dst @ W_loop), bf16 MXU / f32 acc
    @pl.when((r == 0) & (k == 0))
    def _():
        dst0 = pl.multiple_of(i * tile_n, tile_n)
        x_dst = x_ref[pl.ds(dst0, tile_n), :]
        o_ref[...] = (jnp.dot(x_dst, loopw_ref[...],
                              preferred_element_type=jnp.float32)
                      + bias_ref[...])

    # ---- zero the per-(dst tile, relation) aggregation accumulator
    @pl.when(k == 0)
    def _():
        agg_ref[...] = jnp.zeros_like(agg_ref)

    # ---- message aggregation: A_r[dst_tile, src_tile] @ X[src_tile]  (bf16 MXU, f32 acc)
    src0 = pl.multiple_of(k * tile_n, tile_n)
    x_src = x_ref[pl.ds(src0, tile_n), :]
    adj_blk = adj_ref[0].astype(jnp.bfloat16)      # int8 0/1 -> bf16 (exact), VPU rides in slack
    agg_ref[...] += jnp.dot(adj_blk, x_src, preferred_element_type=jnp.float32)

    # ---- epilogue for this (dst tile, relation): norm='right' + W_r projection
    @pl.when(k == ns - 1)
    def _():
        agg = agg_ref[...]
        # in-degree came for free via the ones-column of x; extract it with a lane reduce
        col_ids = lax.broadcasted_iota(jnp.int32, agg.shape, 1)
        deg = jnp.sum(jnp.where(col_ids == deg_col, agg, 0.0), axis=1, keepdims=True)
        norm = 1.0 / jnp.maximum(deg, 1.0)
        h = jnp.dot(agg.astype(jnp.bfloat16), w_ref[0],
                    preferred_element_type=jnp.float32)
        o_ref[...] += h * norm                      # norm applied post-projection (out_pad wide)

    # ---- finalize: activation on the very last step for this dst tile
    if apply_relu:
        @pl.when((r == nr - 1) & (k == ns - 1))
        def _():
            o_ref[...] = jnp.maximum(o_ref[...], 0.0)


def _vmem_bytes(tile, n_pad, in_pad, out_pad):
    adj = 2 * tile * tile                       # int8 adjacency block, double-buffered
    xres = 2 * n_pad * in_pad * 2               # resident bf16 features (conservative x2)
    wts = 2 * (2 * in_pad * out_pad * 2 + out_pad * 4)   # W_r + W_loop (bf16) + bias (f32)
    outb = 2 * tile * out_pad * 4               # f32 output tile
    agg = tile * in_pad * 4                     # f32 aggregation scratch
    return adj + xres + wts + outb + agg


def _choose_tiling(n, in_pad, out_pad):
    n128 = _round_up(max(n, 1), _LANE)
    max_tile = 2048 if n128 >= 4096 else 1024
    # at least two dst tiles whenever possible so the "parallel" axis spans v7x's 2 TCs
    min_nt = 1 if n128 <= _LANE else 2
    nt = max(min_nt, pl.cdiv(n128, max_tile))
    while True:
        tile = _round_up(pl.cdiv(n128, nt), _LANE)
        n_pad = nt * tile
        budget = _vmem_bytes(tile, n_pad, in_pad, out_pad)
        if budget <= _VMEM_TILE_CAP or tile <= _LANE:
            break
        nt += 1
    if budget > _VMEM_TILE_CAP:
        # TODO(synk): streamed-x fallback for huge graphs not implemented.
        raise NotImplementedError("node-feature matrix too large for the resident-x kernel")
    return tile, n_pad, budget


def prepare_adjacency(adj, n_pad):
    """One fused HBM pass: transpose to [R, N_dst, N_src], cast exact 0/1 -> int8, pad.
    In a real pipeline hoist/cache this across layer calls (the graph is static)."""
    R, N, _ = adj.shape
    adj_t = jnp.transpose(adj, (0, 2, 1)).astype(jnp.int8)
    return jnp.pad(adj_t, ((0, 0), (0, n_pad - N), (0, n_pad - N)))


@functools.partial(jax.jit, static_argnames=("activation_relu",))
def rel_graph_conv_layer(adj, x, rel_weight, loop_weight, bias, *, activation_relu=True):
    """adj: [R, N_src, N_dst] dense 0/1 adjacency per relation (same node set for src/dst).
       x:   [N, in_feat] node features.
       rel_weight: [R, in_feat, out_feat]; loop_weight: [in_feat, out_feat]; bias: [out_feat]."""
    R, N, _ = adj.shape
    in_feat = x.shape[1]
    out_feat = rel_weight.shape[2]

    in_pad = _round_up(in_feat + 1, _LANE)      # +1: spare column carries the in-degree
    out_pad = _round_up(out_feat, _LANE)
    tile_n, n_pad, budget = _choose_tiling(N, in_pad, out_pad)
    nt = n_pad // tile_n

    # ---- single preprocessing pass over the adjacency (transpose + int8 cast + pad)
    adj_p = prepare_adjacency(adj, n_pad)

    # ---- features: bf16, padded, with a ones-column at `in_feat` (degree via the same matmul)
    x_p = jnp.zeros((n_pad, in_pad), jnp.bfloat16)
    x_p = x_p.at[:N, :in_feat].set(x.astype(jnp.bfloat16))
    x_p = x_p.at[:, in_feat].set(1.0)

    w_p = jnp.pad(rel_weight.astype(jnp.bfloat16),
                  ((0, 0), (0, in_pad - in_feat), (0, out_pad - out_feat)))
    lw_p = jnp.pad(loop_weight.astype(jnp.bfloat16),
                   ((0, in_pad - in_feat), (0, out_pad - out_feat)))
    b_p = jnp.pad(bias.astype(jnp.float32),
                  ((0, out_pad - out_feat),)).reshape(1, out_pad)

    kernel = functools.partial(_rel_graph_conv_kernel, tile_n=tile_n,
                               deg_col=in_feat, apply_relu=activation_relu)

    vmem_limit = int(min(56 * 1024 * 1024,
                         max(32 * 1024 * 1024, budget * 3 // 2 + (8 << 20))))

    out = pl.pallas_call(
        kernel,
        out_shape=jax.ShapeDtypeStruct((n_pad, out_pad), jnp.float32),
        grid_spec=pltpu.PrefetchScalarGridSpec(
            num_scalar_prefetch=0,
            grid=(nt, R, nt),                                     # (dst tile, relation, src tile)
            in_specs=[
                pl.BlockSpec((1, tile_n, tile_n), lambda i, r, k: (r, i, k)),    # A_r^T block (int8)
                pl.BlockSpec((n_pad, in_pad),      lambda i, r, k: (0, 0)),      # x, VMEM-resident
                pl.BlockSpec((1, in_pad, out_pad), lambda i, r, k: (r, 0, 0)),   # W_r
                pl.BlockSpec((in_pad, out_pad),    lambda i, r, k: (0, 0)),      # loop weight
                pl.BlockSpec((1, out_pad),         lambda i, r, k: (0, 0)),      # bias
            ],
            out_specs=pl.BlockSpec((tile_n, out_pad), lambda i, r, k: (i, 0)),
            scratch_shapes=[pltpu.VMEM((tile_n, in_pad), jnp.float32)],
        ),
        compiler_params=pltpu.CompilerParams(
            dimension_semantics=("parallel", "arbitrary", "arbitrary"),
            vmem_limit_bytes=vmem_limit),
    )(adj_p, x_p, w_p, lw_p, b_p)

    return out[:N, :out_feat]


# ----------------------------------------------------------------------------- test harness
def _xavier_uniform(key, shape, gain):
    if len(shape) == 2:
        fan_in, fan_out = shape[0], shape[1]
    else:
        rfs = 1
        for s in shape[2:]:
            rfs *= s
        fan_in, fan_out = shape[1] * rfs, shape[0] * rfs
    bound = gain * (6.0 / (fan_in + fan_out)) ** 0.5
    return jax.random.uniform(key, shape, jnp.float32, -bound, bound)


def _reference(adj, x, rel_weight, loop_weight, bias, activation_relu=True):
    h = x @ loop_weight + bias[None, :]
    for r in range(adj.shape[0]):
        deg = adj[r].sum(axis=0)                       # in-degree of dst nodes
        norm = 1.0 / jnp.maximum(deg, 1.0)
        h = h + ((adj[r].T @ x) * norm[:, None]) @ rel_weight[r]
    if activation_relu:
        h = jnp.maximum(h, 0.0)
    return h


def _run_case(key, R, N, in_feat, out_feat, zero_bias, atol):
    k_adj, k_x, k_w, k_loop, k_b = jax.random.split(key, 5)
    adj = (jax.random.uniform(k_adj, (R, N, N)) < 0.3).astype(jnp.float32)
    x = jax.random.normal(k_x, (N, in_feat), jnp.float32)
    gain = 2.0 ** 0.5                                  # calculate_gain('relu')
    rel_weight = _xavier_uniform(k_w, (R, in_feat, out_feat), gain)
    loop_weight = _xavier_uniform(k_loop, (in_feat, out_feat), gain)
    if zero_bias:
        bias = jnp.zeros((out_feat,), jnp.float32)     # nn.init.zeros_
    else:
        bias = 0.1 * jax.random.normal(k_b, (out_feat,), jnp.float32)

    out = rel_graph_conv_layer(adj, x, rel_weight, loop_weight, bias,
                               activation_relu=True)
    out = jax.block_until_ready(out)
    ref = _reference(adj, x, rel_weight, loop_weight, bias, activation_relu=True)
    assert out.shape == (N, out_feat)
    # tolerance accounts for bf16 features/weights on the MXU (accumulation stays f32)
    err = jnp.max(jnp.abs(out - ref))
    assert jnp.allclose(out, ref, atol=atol, rtol=atol), f"mismatch vs reference, max|err|={err}"


if __name__ == "__main__":
    # Case 1: small deterministic setup (3 relations, 16 nodes, 32 -> 32 feats), single tile.
    _run_case(jax.random.PRNGKey(0), R=3, N=16, in_feat=32, out_feat=32,
              zero_bias=True, atol=5e-2)
    # Case 2: exercises the multi-tile (2 dst x 2 src tiles) path and nonzero bias.
    _run_case(jax.random.PRNGKey(0), R=2, N=300, in_feat=64, out_feat=48,
              zero_bias=False, atol=5e-2)
    print("KERNEL_OK")
</pallas_src>

<mosaic_0001>
module attributes {stable_mosaic.version = 11 : i64} {
  func.func @_rel_graph_conv_kernel(%arg0: i32, %arg1: i32, %arg2: i32, %arg3: memref<1x128x128xi8, #tpu.memory_space<vmem>>, %arg4: memref<128x128xbf16, #tpu.memory_space<vmem>>, %arg5: memref<1x128x128xbf16, #tpu.memory_space<vmem>>, %arg6: memref<128x128xbf16, #tpu.memory_space<vmem>>, %arg7: memref<1x128xf32, #tpu.memory_space<vmem>>, %arg8: memref<128x128xf32, #tpu.memory_space<vmem>>, %arg9: memref<128x128xf32, #tpu.memory_space<vmem>>) attributes {dimension_semantics = [#tpu.dimension_semantics<parallel>, #tpu.dimension_semantics<arbitrary>, #tpu.dimension_semantics<arbitrary>], iteration_bounds = array<i64: 1, 3, 1>, scalar_prefetch = 0 : i64, scratch_operands = 1 : i64, tpu.core_type = #tpu.core_type<tc>, window_params = [{transform_indices = @transform_0, window_bounds = array<i64: 1, 128, 128>}, {pipeline_mode = #tpu.pipeline_mode<synchronous>, transform_indices = @transform_1, window_bounds = array<i64: 128, 128>}, {transform_indices = @transform_2, window_bounds = array<i64: 1, 128, 128>}, {pipeline_mode = #tpu.pipeline_mode<synchronous>, transform_indices = @transform_3, window_bounds = array<i64: 128, 128>}, {pipeline_mode = #tpu.pipeline_mode<synchronous>, transform_indices = @transform_4, window_bounds = array<i64: 1, 128>}, {transform_indices = @transform_5, window_bounds = array<i64: 128, 128>}]} {
    %c0_i32 = arith.constant 0 : i32
    %0 = arith.cmpi eq, %arg1, %c0_i32 : i32
    %c0_i32_0 = arith.constant 0 : i32
    %1 = arith.cmpi eq, %arg2, %c0_i32_0 : i32
    %2 = arith.andi %0, %1 : i1
    %3 = arith.extui %2 : i1 to i32
    %c0_i32_1 = arith.constant 0 : i32
    %4 = arith.cmpi ne, %3, %c0_i32_1 : i32
    scf.if %4 {
      %c128_i32_15 = arith.constant 128 : i32
      %27 = arith.muli %arg0, %c128_i32_15 : i32
      %28 = tpu.assume_multiple %27, 128 : i32
      %29 = arith.index_cast %28 : i32 to index
      %c0_16 = arith.constant 0 : index
      %30 = vector.load %arg4[%29, %c0_16] : memref<128x128xbf16, #tpu.memory_space<vmem>>, vector<128x128xbf16>
      %c0_17 = arith.constant 0 : index
      %c0_18 = arith.constant 0 : index
      %31 = vector.load %arg6[%c0_17, %c0_18] : memref<128x128xbf16, #tpu.memory_space<vmem>>, vector<128x128xbf16>
      %cst_19 = arith.constant dense<0.000000e+00> : vector<128x128xf32>
      %32 = tpu.matmul %30, %31, %cst_19 {dimension_numbers = #tpu.dot_dimension_numbers<[1], [0], [0], [1], [0, 0, 1, 1], [], []>} : vector<128x128xbf16>, vector<128x128xbf16>, vector<128x128xf32> -> vector<128x128xf32>
      %c0_20 = arith.constant 0 : index
      %c0_21 = arith.constant 0 : index
      %33 = vector.load %arg7[%c0_20, %c0_21] : memref<1x128xf32, #tpu.memory_space<vmem>>, vector<1x128xf32>
      %34 = vector.broadcast %33 : vector<1x128xf32> to vector<128x128xf32>
      %35 = arith.addf %32, %34 : vector<128x128xf32>
      %c0_22 = arith.constant 0 : index
      %c0_23 = arith.constant 0 : index
      %36 = vector.load %arg8[%c0_22, %c0_23] : memref<128x128xf32, #tpu.memory_space<vmem>>, vector<128x128xf32>
      tpu.vector_store %arg8[%c0_22, %c0_23], %35 {strides = array<i32>} : memref<128x128xf32, #tpu.memory_space<vmem>>, vector<128x128xf32>,
    } else {
    }
    %c0_i32_2 = arith.constant 0 : i32
    %5 = arith.cmpi eq, %arg2, %c0_i32_2 : i32
    %6 = arith.extui %5 : i1 to i32
    %c0_i32_3 = arith.constant 0 : i32
    %7 = arith.cmpi ne, %6, %c0_i32_3 : i32
    scf.if %7 {
      %cst_15 = arith.constant 0.000000e+00 : f32
      %27 = vector.broadcast %cst_15 : f32 to vector<128x128xf32>
      %c0_16 = arith.constant 0 : index
      %c0_17 = arith.constant 0 : index
      %28 = vector.load %arg9[%c0_16, %c0_17] : memref<128x128xf32, #tpu.memory_space<vmem>>, vector<128x128xf32>
      tpu.vector_store %arg9[%c0_16, %c0_17], %27 {strides = array<i32>} : memref<128x128xf32, #tpu.memory_space<vmem>>, vector<128x128xf32>,
    } else {
    }
    %c128_i32 = arith.constant 128 : i32
    %8 = arith.muli %arg2, %c128_i32 : i32
    %9 = tpu.assume_multiple %8, 128 : i32
    %10 = arith.index_cast %9 : i32 to index
    %c0 = arith.constant 0 : index
    %11 = vector.load %arg4[%10, %c0] : memref<128x128xbf16, #tpu.memory_space<vmem>>, vector<128x128xbf16>
    %c0_4 = arith.constant 0 : index
    %c0_5 = arith.constant 0 : index
    %c0_6 = arith.constant 0 : index
    %12 = vector.load %arg3[%c0_4, %c0_5, %c0_6] : memref<1x128x128xi8, #tpu.memory_space<vmem>>, vector<1x128x128xi8>
    %13 = vector.shape_cast %12 : vector<1x128x128xi8> to vector<128x128xi8>
    %14 = arith.sitofp %13 : vector<128x128xi8> to vector<128x128xbf16>
    %c0_7 = arith.constant 0 : index
    %c0_8 = arith.constant 0 : index
    %15 = vector.load %arg9[%c0_7, %c0_8] : memref<128x128xf32, #tpu.memory_space<vmem>>, vector<128x128xf32>
    %cst = arith.constant dense<0.000000e+00> : vector<128x128xf32>
    %16 = tpu.matmul %14, %11, %cst {dimension_numbers = #tpu.dot_dimension_numbers<[1], [0], [0], [1], [0, 0, 1, 1], [], []>} : vector<128x128xbf16>, vector<128x128xbf16>, vector<128x128xf32> -> vector<128x128xf32>
    %17 = arith.addf %15, %16 : vector<128x128xf32>
    %c0_9 = arith.constant 0 : index
    %c0_10 = arith.constant 0 : index
    %18 = vector.load %arg9[%c0_9, %c0_10] : memref<128x128xf32, #tpu.memory_space<vmem>>, vector<128x128xf32>
    tpu.vector_store %arg9[%c0_9, %c0_10], %17 {strides = array<i32>} : memref<128x128xf32, #tpu.memory_space<vmem>>, vector<128x128xf32>,
    %c0_i32_11 = arith.constant 0 : i32
    %19 = arith.cmpi eq, %arg2, %c0_i32_11 : i32
    %20 = arith.extui %19 : i1 to i32
    %c0_i32_12 = arith.constant 0 : i32
    %21 = arith.cmpi ne, %20, %c0_i32_12 : i32
    scf.if %21 {
      %c0_15 = arith.constant 0 : index
      %c0_16 = arith.constant 0 : index
      %27 = vector.load %arg9[%c0_15, %c0_16] : memref<128x128xf32, #tpu.memory_space<vmem>>, vector<128x128xf32>
      %28 = tpu.iota {dimensions = array<i32: 1>} : vector<128x128xi32>
      %c32_i32 = arith.constant 32 : i32
      %29 = vector.broadcast %c32_i32 : i32 to vector<128x128xi32>
      %30 = arith.cmpi eq, %28, %29 : vector<128x128xi32>
      %cst_17 = arith.constant 0.000000e+00 : f32
      %31 = vector.broadcast %cst_17 : f32 to vector<128x128xf32>
      %32 = arith.select %30, %27, %31 : vector<128x128xi1>, vector<128x128xf32>
      %cst_18 = arith.constant dense<0.000000e+00> : vector<128xf32>
      %33 = vector.multi_reduction <add>, %32, %cst_18 [1] : vector<128x128xf32> to vector<128xf32>
      %34 = vector.shape_cast %33 : vector<128xf32> to vector<128x1xf32>
      %cst_19 = arith.constant 1.000000e+00 : f32
      %35 = vector.broadcast %cst_19 : f32 to vector<128x1xf32>
      %36 = arith.maximumf %34, %35 : vector<128x1xf32>
      %cst_20 = arith.constant 1.000000e+00 : f32
      %37 = vector.broadcast %cst_20 : f32 to vector<128x1xf32>
      %38 = arith.divf %37, %36 : vector<128x1xf32>
      %39 = arith.truncf %27 : vector<128x128xf32> to vector<128x128xbf16>
      %c0_21 = arith.constant 0 : index
      %c0_22 = arith.constant 0 : index
      %c0_23 = arith.constant 0 : index
      %40 = vector.load %arg5[%c0_21, %c0_22, %c0_23] : memref<1x128x128xbf16, #tpu.memory_space<vmem>>, vector<1x128x128xbf16>
      %41 = vector.shape_cast %40 : vector<1x128x128xbf16> to vector<128x128xbf16>
      %cst_24 = arith.constant dense<0.000000e+00> : vector<128x128xf32>
      %42 = tpu.matmul %39, %41, %cst_24 {dimension_numbers = #tpu.dot_dimension_numbers<[1], [0], [0], [1], [0, 0, 1, 1], [], []>} : vector<128x128xbf16>, vector<128x128xbf16>, vector<128x128xf32> -> vector<128x128xf32>
      %c0_25 = arith.constant 0 : index
      %c0_26 = arith.constant 0 : index
      %43 = vector.load %arg8[%c0_25, %c0_26] : memref<128x128xf32, #tpu.memory_space<vmem>>, vector<128x128xf32>
      %44 = vector.broadcast %38 : vector<128x1xf32> to vector<128x128xf32>
      %45 = arith.mulf %42, %44 : vector<128x128xf32>
      %46 = arith.addf %43, %45 : vector<128x128xf32>
      %c0_27 = arith.constant 0 : index
      %c0_28 = arith.constant 0 : index
      %47 = vector.load %arg8[%c0_27, %c0_28] : memref<128x128xf32, #tpu.memory_space<vmem>>, vector<128x128xf32>
      tpu.vector_store %arg8[%c0_27, %c0_28], %46 {strides = array<i32>} : memref<128x128xf32, #tpu.memory_space<vmem>>, vector<128x128xf32>,
    } else {
    }
    %c2_i32 = arith.constant 2 : i32
    %22 = arith.cmpi eq, %arg1, %c2_i32 : i32
    %c0_i32_13 = arith.constant 0 : i32
    %23 = arith.cmpi eq, %arg2, %c0_i32_13 : i32
    %24 = arith.andi %22, %23 : i1
    %25 = arith.extui %24 : i1 to i32
    %c0_i32_14 = arith.constant 0 : i32
    %26 = arith.cmpi ne, %25, %c0_i32_14 : i32
    scf.if %26 {
      %c0_15 = arith.constant 0 : index
      %c0_16 = arith.constant 0 : index
      %27 = vector.load %arg8[%c0_15, %c0_16] : memref<128x128xf32, #tpu.memory_space<vmem>>, vector<128x128xf32>
      %cst_17 = arith.constant 0.000000e+00 : f32
      %28 = vector.broadcast %cst_17 : f32 to vector<128x128xf32>
      %29 = arith.maximumf %27, %28 : vector<128x128xf32>
      %c0_18 = arith.constant 0 : index
      %c0_19 = arith.constant 0 : index
      %30 = vector.load %arg8[%c0_18, %c0_19] : memref<128x128xf32, #tpu.memory_space<vmem>>, vector<128x128xf32>
      tpu.vector_store %arg8[%c0_18, %c0_19], %29 {strides = array<i32>} : memref<128x128xf32, #tpu.memory_space<vmem>>, vector<128x128xf32>,
    } else {
    }
    return
  }
  func.func @transform_0(%arg0: i32, %arg1: i32, %arg2: i32) -> (i32, i32, i32) {
    %c0_i32 = arith.constant 0 : i32
    return %arg1, %arg0, %arg2 : i32, i32, i32
  }
  func.func @transform_1(%arg0: i32, %arg1: i32, %arg2: i32) -> (i32, i32) {
    %c0_i32 = arith.constant 0 : i32
    %c0_i32_0 = arith.constant 0 : i32
    %c0_i32_1 = arith.constant 0 : i32
    return %c0_i32, %c0_i32_0 : i32, i32
  }
  func.func @transform_2(%arg0: i32, %arg1: i32, %arg2: i32) -> (i32, i32, i32) {
    %c0_i32 = arith.constant 0 : i32
    %c0_i32_0 = arith.constant 0 : i32
    %c0_i32_1 = arith.constant 0 : i32
    return %arg1, %c0_i32, %c0_i32_0 : i32, i32, i32
  }
  func.func @transform_3(%arg0: i32, %arg1: i32, %arg2: i32) -> (i32, i32) {
    %c0_i32 = arith.constant 0 : i32
    %c0_i32_0 = arith.constant 0 : i32
    %c0_i32_1 = arith.constant 0 : i32
    return %c0_i32, %c0_i32_0 : i32, i32
  }
  func.func @transform_4(%arg0: i32, %arg1: i32, %arg2: i32) -> (i32, i32) {
    %c0_i32 = arith.constant 0 : i32
    %c0_i32_0 = arith.constant 0 : i32
    %c0_i32_1 = arith.constant 0 : i32
    return %c0_i32, %c0_i32_0 : i32, i32
  }
  func.func @transform_5(%arg0: i32, %arg1: i32, %arg2: i32) -> (i32, i32) {
    %c0_i32 = arith.constant 0 : i32
    %c0_i32_0 = arith.constant 0 : i32
    return %arg0, %c0_i32 : i32, i32
  }
}

</mosaic_0001>

<bundles_post_ra>
// kernel: rel_graph_conv_layer.1
= control target key start
LH: loop header
LB: loop body
LE: loop exit
PB: predicated region body
PF: predicated region fallthrough
CT: control target
= control target key end

     0   :  { %s1644_s18 = smov 0   ;;  %s1646_s19 = smov 0   ;;  %s2051_s0 = inlined_call_operand.vmem [shape: s8[3,128,128], index: 0, kind: input, shape index: {}]   ;;  %s2052_s1 = inlined_call_operand.vmem [shape: bf16[128,128], index: 1, kind: input, shape index: {}]   ;;  %s2053_s2 = inlined_call_operand.vmem [shape: bf16[3,128,128], index: 2, kind: input, shape index: {}]   ;;  %s2054_s3 = inlined_call_operand.vmem [shape: bf16[128,128], index: 3, kind: input, shape index: {}]   ;;  %s2055_s4 = inlined_call_operand.vmem [shape: f32[1,128], index: 4, kind: input, shape index: {}]   ;;  %s2056_s5 = inlined_call_operand.vmem [shape: f32[128,128], index: 5, kind: output, shape index: {}]  }
   0x1   :  { %s1648_s20 = smov 0  }
   0x2 LB: > { %s30_s21 = sadd.s32 1, %s1608_s19  ;;  %p1294_p0 = scmp.ge.s32.totalorder %s1612_s20, 1  ;;  %s1612_s20 = sphi %s1648_s20, %s15_s20   ;;  %s1608_s19 = sphi %s1646_s19, %s2058_s19   ;;  %s1604_s18 = sphi %s1644_s18, %s2057_s18  }
   0x3   : > { %p32_p1 = scmp.ge.s32.totalorder %s30_s21, 3  ;;  %p228_p2 = scmp.lt.s32.totalorder %s1612_s20, 4 }
   0x5   : > { %s2060_s21 = smov (%p32_p1, %s30_s21), 0  ;;  %p229_p3 = pnand %p1294_p0, %p228_p2 }
   0x6   : > { %p269_p4 = scmp.lt.s32.totalorder (!%p229_p3), %s1604_s18, 2  ;;  %p293_p5 = scmp.eq.s32.totalorder (!%p229_p3), %s1604_s18, 0 }
   0x7   : > { %232 = sbr.rel (%p229_p3) target bundleno = 779 (0x30b), region = 40 }
   0xe   : > { %s270_s22 = scalar_select %p269_p4, %s1604_s18, 2 }
   0xf   : > { %298 = sbr.rel (!%p293_p5) target bundleno = 274 (0x112), region = 44  ;;  %v1526_v0 = vld [vmem:[%s2054_s3] sm:$0xff] (%p293_p5)   ;;  %v1527_v1 = vld [vmem:[%s2054_s3 + $0x8] sm:$0xff] (%p293_p5)   ;;  %v1528_v2 = vld [vmem:[%s2054_s3 + $0x10] sm:$0xff] (%p293_p5)  }
  0x10   : > { %s1338_s23 = sshll.u32 %s270_s22, 5  ;;  %s1339_s24 = sshll.u32 %s270_s22, 6  ;;  %1390 = vmatprep.subr.bf16.mxu0 (%p293_p5), %v1526_v0  ;;  %1486 = vmatprep.subr.bf16.mxu1 (%p293_p5), %v1526_v0  ;;  %v1529_v3 = vld [vmem:[%s2054_s3 + $0x18] sm:$0xff] (%p293_p5)   ;;  %v1534_v4 = vld [vmem:[%s2052_s1] sm:$0xff] (%p293_p5)   ;;  %v1531_v7 = vld [vmem:[%s2054_s3 + $0x28] sm:$0xff] (%p293_p5)  }
  0x11   : > { %s1670_s27 = scalar_lea.vmem %s2051_s0, %s1338_s23  ;;  %s1675_s30 = scalar_lea.vmem %s2053_s2, %s1339_s24  ;;  %1391 = vmatpush3.bf16.msra.mxu0 (%p293_p5), %v1526_v0  ;;  %1494 = vmatpush3.bf16.msra.mxu1 (%p293_p5), %v1526_v0  ;;  %v1535_v5 = vld [vmem:[%s2052_s1 + $0x20] sm:$0xff] (%p293_p5)   ;;  %v1532_v8 = vld [vmem:[%s2054_s3 + $0x30] sm:$0xff] (%p293_p5)   ;;  %v1533_v9 = vld [vmem:[%s2054_s3 + $0x38] sm:$0xff] (%p293_p5)  }
  0x12   : > { %1392 = vmatprep.subr.bf16.mxu0 (%p293_p5), %v1527_v1  ;;  %1487 = vmatprep.subr.bf16.mxu1 (%p293_p5), %v1527_v1  ;;  %v1530_v6 = vld [vmem:[%s2054_s3 + $0x20] sm:$0xff] (%p293_p5)   ;;  %v1536_v10 = vld [vmem:[%s2052_s1 + $0x8] sm:$0xff] (%p293_p5)   ;;  %v1538_v12 = vld [vmem:[%s2052_s1 + $0x10] sm:$0xff] (%p293_p5)  }
  0x13   : > { %1406 = vmatprep.mubr.bf16.mxu0 (%p293_p5), %v1534_v4  ;;  %1414 = vmatprep.mubr.bf16.mxu1 (%p293_p5), %v1535_v5  ;;  %v1537_v11 = vld [vmem:[%s2052_s1 + $0x28] sm:$0xff] (%p293_p5)   ;;  %v1539_v13 = vld [vmem:[%s2052_s1 + $0x30] sm:$0xff] (%p293_p5)   ;;  %v1540_v14 = vld [vmem:[%s2052_s1 + $0x18] sm:$0xff] (%p293_p5)  }
  0x14   : > { %v1541_v15 = vld [vmem:[%s2052_s1 + $0x38] sm:$0xff] (%p293_p5)   ;;  %v1300_v16 = vld [vmem:[%s2055_s4] ss:$0 sm:$0xff] (%p293_p5) }
  0x15   : > { %1393 = vmatpush3.bf16.msra.mxu0 (%p293_p5), %v1527_v1  ;;  %1495 = vmatpush3.bf16.msra.mxu1 (%p293_p5), %v1527_v1 }
  0x16   : > { %1394 = vmatprep.subr.bf16.mxu0 %v1528_v2  ;;  %1488 = vmatprep.subr.bf16.mxu1 %v1528_v2 }
  0x19   : > { %1395 = vmatpush3.bf16.msra.mxu0 %v1528_v2  ;;  %1496 = vmatpush3.bf16.msra.mxu1 %v1528_v2 }
  0x1a   : > { %1396 = vmatprep.subr.bf16.mxu0 %v1529_v3  ;;  %1489 = vmatprep.subr.bf16.mxu1 %v1529_v3 }
  0x1d   : > { %1397 = vmatpush3.bf16.msra.mxu0 %v1529_v3  ;;  %1497 = vmatpush3.bf16.msra.mxu1 %v1529_v3 }
  0x1e   : > { %1398 = vmatprep.subr.bf16.mxu0 %v1530_v6  ;;  %1490 = vmatprep.subr.bf16.mxu1 %v1530_v6 }
  0x21   : > { %1399 = vmatpush3.bf16.msra.mxu0 %v1530_v6  ;;  %1498 = vmatpush3.bf16.msra.mxu1 %v1530_v6 }
  0x22   : > { %1400 = vmatprep.subr.bf16.mxu0 %v1531_v7  ;;  %1491 = vmatprep.subr.bf16.mxu1 %v1531_v7 }
  0x25   : > { %1401 = vmatpush3.bf16.msra.mxu0 %v1531_v7  ;;  %1499 = vmatpush3.bf16.msra.mxu1 %v1531_v7 }
  0x26   : > { %1402 = vmatprep.subr.bf16.mxu0 %v1532_v8  ;;  %1492 = vmatprep.subr.bf16.mxu1 %v1532_v8 }
  0x29   : > { %1403 = vmatpush3.bf16.msra.mxu0 %v1532_v8  ;;  %1500 = vmatpush3.bf16.msra.mxu1 %v1532_v8 }
  0x2a   : > { %1404 = vmatprep.subr.bf16.mxu0 %v1533_v9  ;;  %1493 = vmatprep.subr.bf16.mxu1 %v1533_v9 }
  0x2d   : > { %1405 = vmatpush3.bf16.msra.mxu0 %v1533_v9  ;;  %1501 = vmatpush3.bf16.msra.mxu1 %v1533_v9 }
  0x30   : > { %1407 = vmatmul.mubr.bf16.vlgmr.msra.gmra.mrb[0].mxu0 %v1536_v10  ;;  %1415 = vmatmul.mubr.bf16.vlgmr.msra.gmra.mrb[0].mxu1 %v1537_v11 }
  0x31   : > { %1410 = vmatprep.mubr.bf16.mxu0 %v1538_v12  ;;  %1418 = vmatprep.mubr.bf16.mxu1 %v1539_v13 }
  0x38   : > { %1411 = vmatmul.mubr.bf16.gmra.mrb[4].mxu0 %v1540_v14  ;;  %1419 = vmatmul.mubr.bf16.gmra.mrb[4].mxu1 %v1541_v15 }
 0x103   : > { %v1408_v17 = vpop.f32.mrb[0].mxu0  ;;  %v1416_v18 = vpop.f32.mrb[0].mxu1 }
 0x104   : > { %v482_v19 = vadd.f32 %v1408_v17, %v1300_v16  ;;  %v514_v20 = vadd.f32 %v1416_v18, %v1300_v16  ;;  %v473_v21 = vpop.f32.mrb[1].mxu0  ;;  %v505_v22 = vpop.f32.mrb[1].mxu1 }
 0x105   : > { %v474_v23 = vadd.f32 %v1300_v16, %v473_v21  ;;  %v506_v24 = vadd.f32 %v1300_v16, %v505_v22  ;;  %v1409_v25 = vpop.f32.mrb[2].mxu0  ;;  %v1417_v26 = vpop.f32.mrb[2].mxu1 }
 0x106   : > { %538 = vst [vmem:[%s2056_s5 + $0x10] sm:$0xff] %v482_v19  ;;  %546 = vst [vmem:[%s2056_s5 + $0x50] sm:$0xff] %v514_v20  ;;  %v485_v27 = vadd.f32 %v1409_v25, %v1300_v16  ;;  %v517_v28 = vadd.f32 %v1417_v26, %v1300_v16  ;;  %v476_v29 = vpop.f32.mrb[3].mxu0  ;;  %v508_v30 = vpop.f32.mrb[3].mxu1 }
 0x107   : > { %536 = vst [vmem:[%s2056_s5] sm:$0xff] %v474_v23  ;;  %544 = vst [vmem:[%s2056_s5 + $0x40] sm:$0xff] %v506_v24  ;;  %v477_v31 = vadd.f32 %v1300_v16, %v476_v29  ;;  %v509_v32 = vadd.f32 %v1300_v16, %v508_v30 }
 0x108   : > { %539 = vst [vmem:[%s2056_s5 + $0x18] sm:$0xff] %v485_v27  ;;  %547 = vst [vmem:[%s2056_s5 + $0x58] sm:$0xff] %v517_v28 }
 0x109   : > { %537 = vst [vmem:[%s2056_s5 + $0x8] sm:$0xff] %v477_v31  ;;  %545 = vst [vmem:[%s2056_s5 + $0x48] sm:$0xff] %v509_v32 }
 0x10b   : > { %v1412_v33 = vpop.f32.mrb[4].mxu0  ;;  %v1420_v34 = vpop.f32.mrb[4].mxu1 }
 0x10c   : > { %v498_v35 = vadd.f32 %v1412_v33, %v1300_v16  ;;  %v530_v36 = vadd.f32 %v1420_v34, %v1300_v16  ;;  %v489_v37 = vpop.f32.mrb[5].mxu0  ;;  %v521_v38 = vpop.f32.mrb[5].mxu1 }
 0x10d   : > { %v490_v39 = vadd.f32 %v1300_v16, %v489_v37  ;;  %v522_v40 = vadd.f32 %v1300_v16, %v521_v38  ;;  %v1413_v41 = vpop.f32.mrb[6].mxu0  ;;  %v1421_v42 = vpop.f32.mrb[6].mxu1 }
 0x10e   : > { %542 = vst [vmem:[%s2056_s5 + $0x30] sm:$0xff] %v498_v35  ;;  %550 = vst [vmem:[%s2056_s5 + $0x70] sm:$0xff] %v530_v36  ;;  %v501_v43 = vadd.f32 %v1413_v41, %v1300_v16  ;;  %v533_v44 = vadd.f32 %v1421_v42, %v1300_v16  ;;  %v492_v45 = vpop.f32.mrb[7].mxu0  ;;  %v524_v46 = vpop.f32.mrb[7].mxu1 }
 0x10f   : > { %540 = vst [vmem:[%s2056_s5 + $0x20] sm:$0xff] %v490_v39  ;;  %548 = vst [vmem:[%s2056_s5 + $0x60] sm:$0xff] %v522_v40  ;;  %v493_v47 = vadd.f32 %v1300_v16, %v492_v45  ;;  %v525_v48 = vadd.f32 %v1300_v16, %v524_v46 }
 0x110   : > { %543 = vst [vmem:[%s2056_s5 + $0x38] sm:$0xff] %v501_v43  ;;  %551 = vst [vmem:[%s2056_s5 + $0x78] sm:$0xff] %v533_v44 }
 0x111   : > { %541 = vst [vmem:[%s2056_s5 + $0x28] sm:$0xff] %v493_v47  ;;  %549 = vst [vmem:[%s2056_s5 + $0x68] sm:$0xff] %v525_v48 }
 0x112 PF: > { %v1542_v49 = vld [vmem:[%s2052_s1] sm:$0xff]   ;;  %v1543_v50 = vld [vmem:[%s2052_s1 + $0x8] sm:$0xff]   ;;  %v1544_v51 = vld [vmem:[%s2052_s1 + $0x10] sm:$0xff]   ;;  %v816_v13 = vlaneseq  ;;  %p1148_p6 = scmp.eq.s32.totalorder %s1604_s18, 2 }
 0x113   : > { %1422 = vmatprep.subr.bf16.mxu0 %v1542_v49  ;;  %v1545_v52 = vld [vmem:[%s2052_s1 + $0x18] sm:$0xff]   ;;  %v592_v53 = vld [vmem:[%s1670_s27] sm:$0xff]  ;;  %v1551_v56 = vld [vmem:[%s1675_s30 + $0x8] sm:$0xff]  }
 0x114   : > { %1423 = vmatpush3.bf16.msra.mxu0 %v1542_v49  ;;  %v596_v54 = vunpack.c.l.s8.bf16 %v592_v53  ;;  %v1550_v55 = vld [vmem:[%s1675_s30] sm:$0xff]   ;;  %v1552_v58 = vld [vmem:[%s1675_s30 + $0x10] sm:$0xff]   ;;  %v1547_v59 = vld [vmem:[%s2052_s1 + $0x28] sm:$0xff]   ;;  %v597_v2 = vunpack.c.h.s8.bf16 %v592_v53  ;;  %v1812_v14 = vand.u32 127, %v816_v13 }
 0x115   : > { %1424 = vmatprep.subr.bf16.mxu0 %v1543_v50  ;;  %v1546_v57 = vld [vmem:[%s2052_s1 + $0x20] sm:$0xff]   ;;  %1454 = vmatprep.subr.bf16.mxu1 %v1550_v55  ;;  %v1553_v60 = vld [vmem:[%s1675_s30 + $0x18] sm:$0xff]   ;;  %v1548_v61 = vld [vmem:[%s2052_s1 + $0x30] sm:$0xff]  }
 0x116   : > { %1438 = vmatprep.mubr.bf16.mxu0 %v596_v54  ;;  %1455 = vmatpush3.bf16.msra.mxu1 %v1550_v55  ;;  %v1554_v62 = vld [vmem:[%s1675_s30 + $0x20] sm:$0xff]   ;;  %v1549_v63 = vld [vmem:[%s2052_s1 + $0x38] sm:$0xff]   ;;  %v1555_v0 = vld [vmem:[%s1675_s30 + $0x28] sm:$0xff]   ;;  %vm818_vm0 = vcmp.eq.s32.totalorder %v1812_v14, 32 }
 0x117   : > { %1456 = vmatprep.subr.bf16.mxu1 %v1551_v56  ;;  %v593_v1 = vld [vmem:[%s1670_s27 + $0x8] sm:$0xff]  ;;  %v1556_v3 = vld [vmem:[%s1675_s30 + $0x30] sm:$0xff]   ;;  %v595_v8 = vld [vmem:[%s1670_s27 + $0x18] sm:$0xff] }
 0x118   : > { %1425 = vmatpush3.bf16.msra.mxu0 %v1543_v50  ;;  %v598_v4 = vunpack.c.l.s8.bf16 %v593_v1  ;;  %v594_v5 = vld [vmem:[%s1670_s27 + $0x10] sm:$0xff]  ;;  %v599_v6 = vunpack.c.h.s8.bf16 %v593_v1  ;;  %v602_v10 = vunpack.c.l.s8.bf16 %v595_v8  ;;  %v603_v11 = vunpack.c.h.s8.bf16 %v595_v8  ;;  %v1557_v12 = vld [vmem:[%s1675_s30 + $0x38] sm:$0xff]  }
 0x119   : > { %1426 = vmatprep.subr.bf16.mxu0 %v1544_v51  ;;  %v600_v7 = vunpack.c.l.s8.bf16 %v594_v5  ;;  %v601_v9 = vunpack.c.h.s8.bf16 %v594_v5  ;;  %v1086_v13 = vld [vmem:[%s2056_s5 + $0x10] sm:$0xff] }
 0x11a   : > { %1457 = vmatpush3.bf16.msra.mxu1 %v1551_v56 }
 0x11b   : > { %1458 = vmatprep.subr.bf16.mxu1 %v1552_v58 }
 0x11c   : > { %1427 = vmatpush3.bf16.msra.mxu0 %v1544_v51 }
 0x11d   : > { %1428 = vmatprep.subr.bf16.mxu0 %v1545_v52 }
 0x11e   : > { %1459 = vmatpush3.bf16.msra.mxu1 %v1552_v58 }
 0x11f   : > { %1460 = vmatprep.subr.bf16.mxu1 %v1553_v60 }
 0x120   : > { %1429 = vmatpush3.bf16.msra.mxu0 %v1545_v52 }
 0x121   : > { %1430 = vmatprep.subr.bf16.mxu0 %v1546_v57 }
 0x122   : > { %1461 = vmatpush3.bf16.msra.mxu1 %v1553_v60 }
 0x123   : > { %1462 = vmatprep.subr.bf16.mxu1 %v1554_v62 }
 0x124   : > { %1431 = vmatpush3.bf16.msra.mxu0 %v1546_v57 }
 0x125   : > { %1432 = vmatprep.subr.bf16.mxu0 %v1547_v59 }
 0x126   : > { %1463 = vmatpush3.bf16.msra.mxu1 %v1554_v62 }
 0x127   : > { %1464 = vmatprep.subr.bf16.mxu1 %v1555_v0 }
 0x128   : > { %1433 = vmatpush3.bf16.msra.mxu0 %v1547_v59 }
 0x129   : > { %1434 = vmatprep.subr.bf16.mxu0 %v1548_v61 }
 0x12a   : > { %1465 = vmatpush3.bf16.msra.mxu1 %v1555_v0 }
 0x12b   : > { %1466 = vmatprep.subr.bf16.mxu1 %v1556_v3 }
 0x12c   : > { %1435 = vmatpush3.bf16.msra.mxu0 %v1548_v61 }
 0x12d   : > { %1436 = vmatprep.subr.bf16.mxu0 %v1549_v63 }
 0x12e   : > { %1467 = vmatpush3.bf16.msra.mxu1 %v1556_v3 }
 0x12f   : > { %1468 = vmatprep.subr.bf16.mxu1 %v1557_v12 }
 0x130   : > { %1437 = vmatpush3.bf16.msra.mxu0 %v1549_v63 }
 0x132   : > { %1469 = vmatpush3.bf16.msra.mxu1 %v1557_v12 }
 0x133   : > { %1439 = vmatmul.mubr.bf16.vlgmr.msra.gmra.mrb[0].mxu0 %v597_v2 }
 0x134   : > { %1442 = vmatprep.mubr.bf16.mxu0 %v598_v4 }
 0x13b   : > { %1443 = vmatmul.mubr.bf16.gmra.mrb[4].mxu0 %v599_v6 }
 0x13c   : > { %1446 = vmatprep.mubr.bf16.mxu0 %v600_v7 }
 0x143   : > { %1447 = vmatmul.mubr.bf16.gmra.mrb[8].mxu0 %v601_v9 }
 0x144   : > { %1450 = vmatprep.mubr.bf16.mxu0 %v602_v10 }
 0x14b   : > { %1451 = vmatmul.mubr.bf16.gmra.mrb[12].mxu0 %v603_v11 }
 0x206   : > { %v1440_v15 = vpop.f32.mrb[0].mxu0 }
 0x207   : > { %v702_v16 = vpop.f32.mrb[1].mxu0  ;;  %v821_v17 = vsel %vm818_vm0, %v1440_v15, 0.0 }
 0x208   : > { %839 = vadd.xlane.f32.xlu1 %v821_v17  ;;  %v1441_v18 = vpop.f32.mrb[2].mxu0  ;;  %v819_v19 = vsel %vm818_vm0, %v702_v16, 0.0 }
 0x209   : > { %v916_v20 = vpack.c.bf16 %v1441_v18, %v1440_v15  ;;  %835 = vadd.xlane.f32.xlu0 %v819_v19  ;;  %v705_v21 = vpop.f32.mrb[3].mxu0  ;;  %v822_v23 = vsel %vm818_vm0, %v1441_v18, 0.0  ;;  %v1084_v18 = vld [vmem:[%s2056_s5] sm:$0xff] }
 0x20a   : > { %v915_v22 = vpack.c.bf16 %v705_v21, %v702_v16  ;;  %v820_v24 = vsel %vm818_vm0, %v705_v21, 0.0 }
 0x20c   : > { %841 = vadd.xlane.f32.xlu1 %v822_v23  ;;  %1470 = vmatprep.mubr.bf16.mxu1 %v915_v22  ;;  %v1087_v23 = vld [vmem:[%s2056_s5 + $0x18] sm:$0xff] }
 0x20d   : > { %1471 = vmatmul.mubr.bf16.vlgmr.msra.gmra.mrb[0].mxu1 %v916_v20  ;;  %837 = vadd.xlane.f32.xlu0 %v820_v24 }
 0x20e   : > { %v1444_v25 = vpop.f32.mrb[4].mxu0 }
 0x20f   : > { %v718_v26 = vpop.f32.mrb[5].mxu0  ;;  %v825_v27 = vsel %vm818_vm0, %v1444_v25, 0.0 }
 0x210   : > { %v1445_v28 = vpop.f32.mrb[6].mxu0  ;;  %v823_v33 = vsel %vm818_vm0, %v718_v26, 0.0 }
 0x211   : > { %v918_v29 = vpack.c.bf16 %v1445_v28, %v1444_v25  ;;  %847 = vadd.xlane.f32.xlu0 %v825_v27  ;;  %v721_v30 = vpop.f32.mrb[7].mxu0  ;;  %v826_v31 = vsel %vm818_vm0, %v1445_v28, 0.0 }
 0x212   : > { %v917_v32 = vpack.c.bf16 %v721_v30, %v718_v26  ;;  %849 = vadd.xlane.f32.xlu1 %v826_v31  ;;  %v824_v34 = vsel %vm818_vm0, %v721_v30, 0.0  ;;  %v1085_v30 = vld [vmem:[%s2056_s5 + $0x8] sm:$0xff] }
 0x214   : > { %1474 = vmatprep.mubr.bf16.mxu1 %v917_v32 }
 0x215   : > { %843 = vadd.xlane.f32.xlu0 %v823_v33  ;;  %1475 = vmatmul.mubr.bf16.gmra.mrb[4].mxu1 %v918_v29 }
 0x216   : > { %845 = vadd.xlane.f32.xlu1 %v824_v34  ;;  %v1448_v35 = vpop.f32.mrb[8].mxu0 }
 0x217   : > { %v734_v36 = vpop.f32.mrb[9].mxu0  ;;  %v829_v37 = vsel %vm818_vm0, %v1448_v35, 0.0 }
 0x218   : > { %v1449_v38 = vpop.f32.mrb[10].mxu0  ;;  %v827_v43 = vsel %vm818_vm0, %v734_v36, 0.0 }
 0x219   : > { %v920_v39 = vpack.c.bf16 %v1449_v38, %v1448_v35  ;;  %855 = vadd.xlane.f32.xlu0 %v829_v37  ;;  %v737_v40 = vpop.f32.mrb[11].mxu0  ;;  %v830_v41 = vsel %vm818_vm0, %v1449_v38, 0.0 }
 0x21a   : > { %v919_v42 = vpack.c.bf16 %v737_v40, %v734_v36  ;;  %857 = vadd.xlane.f32.xlu1 %v830_v41  ;;  %v828_v44 = vsel %vm818_vm0, %v737_v40, 0.0  ;;  %v1090_v40 = vld [vmem:[%s2056_s5 + $0x30] sm:$0xff] }
 0x21c   : > { %1478 = vmatprep.mubr.bf16.mxu1 %v919_v42 }
 0x21d   : > { %851 = vadd.xlane.f32.xlu0 %v827_v43  ;;  %1479 = vmatmul.mubr.bf16.gmra.mrb[8].mxu1 %v920_v39 }
 0x21e   : > { %853 = vadd.xlane.f32.xlu1 %v828_v44  ;;  %v1452_v45 = vpop.f32.mrb[12].mxu0 }
 0x21f   : > { %v750_v46 = vpop.f32.mrb[13].mxu0  ;;  %v833_v53 = vsel %vm818_vm0, %v1452_v45, 0.0 }
 0x220   : > { %v1453_v47 = vpop.f32.mrb[14].mxu0  ;;  %v831_v48 = vsel %vm818_vm0, %v750_v46, 0.0 }
 0x221   : > { %v922_v49 = vpack.c.bf16 %v1453_v47, %v1452_v45  ;;  %859 = vadd.xlane.f32.xlu0 %v831_v48  ;;  %v753_v50 = vpop.f32.mrb[15].mxu0  ;;  %v834_v54 = vsel %vm818_vm0, %v1453_v47, 0.0  ;;  %v1088_v45 = vld [vmem:[%s2056_s5 + $0x20] sm:$0xff] }
 0x222   : > { %v921_v51 = vpack.c.bf16 %v753_v50, %v750_v46  ;;  %v832_v52 = vsel %vm818_vm0, %v753_v50, 0.0  ;;  %v1091_v50 = vld [vmem:[%s2056_s5 + $0x38] sm:$0xff] }
 0x223   : > { %861 = vadd.xlane.f32.xlu1 %v832_v52 }
 0x224   : > { %1482 = vmatprep.mubr.bf16.mxu1 %v921_v51 }
 0x225   : > { %863 = vadd.xlane.f32.xlu0 %v833_v53  ;;  %1483 = vmatmul.mubr.bf16.gmra.mrb[12].mxu1 %v922_v49 }
 0x227   : > { %865 = vadd.xlane.f32.xlu1 %v834_v54 }
 0x295   : > { %v840_v56 = vpop.xlane.xlu1 %839 }
 0x296   : > { %v836_v55 = vpop.xlane.xlu0 %835  ;;  %v869_v63 = vmax.f32 %v840_v56, 1.0  ;;  %v1089_v56 = vld [vmem:[%s2056_s5 + $0x28] sm:$0xff] }
 0x297   : > { %v867_v0 = vmax.f32 %v836_v55, 1.0 }
 0x298   : > { %1558 = vrcp.f32 %v869_v63 }
 0x299   : > { %v842_v58 = vpop.xlane.xlu1 %841  ;;  %1560 = vrcp.f32 %v867_v0 }
 0x29a   : > { %v838_v57 = vpop.xlane.xlu0 %837  ;;  %v870_v1 = vmax.f32 %v842_v58, 1.0 }
 0x29b   : > { %v868_v2 = vmax.f32 %v838_v57, 1.0 }
 0x29c   : > { %1562 = vrcp.f32 %v870_v1  ;;  %v1094_v1 = vld [vmem:[%s2056_s5 + $0x50] sm:$0xff] }
 0x29d   : > { %1564 = vrcp.f32 %v868_v2 }
 0x29e   : > { %v848_v59 = vpop.xlane.xlu0 %847 }
 0x29f   : > { %v850_v60 = vpop.xlane.xlu1 %849  ;;  %v873_v5 = vmax.f32 %v848_v59, 1.0 }
 0x2a0   : > { %v874_v8 = vmax.f32 %v850_v60, 1.0 }
 0x2a1   : > { %1566 = vrcp.f32 %v873_v5  ;;  %v1092_v5 = vld [vmem:[%s2056_s5 + $0x40] sm:$0xff] }
 0x2a2   : > { %v844_v61 = vpop.xlane.xlu0 %843  ;;  %v1559_v11 = vpop.eup %1558 }
 0x2a3   : > { %v846_v62 = vpop.xlane.xlu1 %845  ;;  %v871_v6 = vmax.f32 %v844_v61, 1.0  ;;  %v1561_v14 = vpop.eup %1560 }
 0x2a4   : > { %v872_v9 = vmax.f32 %v846_v62, 1.0 }
 0x2a5   : > { %1568 = vrcp.f32 %v871_v6 }
 0x2a6   : > { %v856_v3 = vpop.xlane.xlu0 %855  ;;  %1570 = vrcp.f32 %v874_v8  ;;  %v1563_v19 = vpop.eup %1562 }
 0x2a7   : > { %v858_v4 = vpop.xlane.xlu1 %857  ;;  %1572 = vrcp.f32 %v872_v9  ;;  %v877_v20 = vmax.f32 %v856_v3, 1.0  ;;  %v1565_v24 = vpop.eup %1564  ;;  %v1095_v9 = vld [vmem:[%s2056_s5 + $0x58] sm:$0xff] }
 0x2a8   : > { %v878_v31 = vmax.f32 %v858_v4, 1.0 }
 0x2a9   : > { %1574 = vrcp.f32 %v877_v20 }
 0x2aa   : > { %v852_v7 = vpop.xlane.xlu0 %851 }
 0x2ab   : > { %v854_v10 = vpop.xlane.xlu1 %853  ;;  %v875_v25 = vmax.f32 %v852_v7, 1.0  ;;  %v1567_v38 = vpop.eup %1566 }
 0x2ac   : > { %v876_v34 = vmax.f32 %v854_v10, 1.0 }
 0x2ad   : > { %1576 = vrcp.f32 %v875_v25  ;;  %v1096_v25 = vld [vmem:[%s2056_s5 + $0x60] sm:$0xff] }
 0x2ae   : > { %v860_v15 = vpop.xlane.xlu0 %859  ;;  %1578 = vrcp.f32 %v878_v31 }
 0x2af   : > { %v1569_v41 = vpop.eup %1568  ;;  %1580 = vrcp.f32 %v876_v34  ;;  %v879_v52 = vmax.f32 %v860_v15, 1.0  ;;  %v1097_v34 = vld [vmem:[%s2056_s5 + $0x68] sm:$0xff] }
 0x2b0   : > { %v862_v26 = vpop.xlane.xlu1 %861  ;;  %v1571_v46 = vpop.eup %1570 }
 0x2b1   : > { %v1573_v51 = vpop.eup %1572  ;;  %v880_v60 = vmax.f32 %v862_v26, 1.0 }
 0x2b2   : > { %v864_v37 = vpop.xlane.xlu0 %863 }
 0x2b3   : > { %v881_v47 = vmax.f32 %v864_v37, 1.0  ;;  %v1575_v63 = vpop.eup %1574 }
 0x2b4   : > { %v866_v42 = vpop.xlane.xlu1 %865 }
 0x2b5   : > { %v882_v57 = vmax.f32 %v866_v42, 1.0  ;;  %1582 = vrcp.f32 %v881_v47 }
 0x2b6   : > { %1584 = vrcp.f32 %v879_v52 }
 0x2b7   : > { %1586 = vrcp.f32 %v882_v57  ;;  %v1577_v2 = vpop.eup %1576 }
 0x2b8   : > { %1588 = vrcp.f32 %v880_v60  ;;  %v1579_v6 = vpop.eup %1578 }
 0x2b9   : > { %v1581_v10 = vpop.eup %1580 }
 0x2e0   : > { %v1472_v12 = vpop.f32.mrb[0].mxu1 }
 0x2e1   : > { %v1102_v16 = vmul.f32 %v1559_v11, %v1472_v12  ;;  %v1021_v17 = vpop.f32.mrb[1].mxu1 }
 0x2e2   : > { %v1100_v21 = vmul.f32 %v1561_v14, %v1021_v17  ;;  %v1473_v22 = vpop.f32.mrb[2].mxu1  ;;  %v1093_v14 = vld [vmem:[%s2056_s5 + $0x48] sm:$0xff] }
 0x2e3   : > { %v1118_v27 = vadd.f32 %v1102_v16, %v1086_v13  ;;  %v1103_v28 = vmul.f32 %v1563_v19, %v1473_v22  ;;  %v1024_v29 = vpop.f32.mrb[3].mxu1  ;;  %v1583_v19 = vpop.eup %1582 }
 0x2e4   : > { %v1116_v32 = vadd.f32 %v1100_v21, %v1084_v18  ;;  %v1101_v33 = vmul.f32 %v1565_v24, %v1024_v29  ;;  %v1098_v21 = vld [vmem:[%s2056_s5 + $0x70] sm:$0xff]  ;;  %v1585_v22 = vpop.eup %1584  ;;  %v1099_v29 = vld [vmem:[%s2056_s5 + $0x78] sm:$0xff] }
 0x2e5   : > { %1134 = vst [vmem:[%s2056_s5 + $0x10] sm:$0xff] %v1118_v27  ;;  %v1119_v35 = vadd.f32 %v1103_v28, %v1087_v23  ;;  %v1587_v26 = vpop.eup %1586 }
 0x2e6   : > { %1132 = vst [vmem:[%s2056_s5] sm:$0xff] %v1116_v32  ;;  %v1117_v36 = vadd.f32 %v1101_v33, %v1085_v30  ;;  %v1589_v30 = vpop.eup %1588 }
 0x2e7   : > { %1135 = vst [vmem:[%s2056_s5 + $0x18] sm:$0xff] %v1119_v35 }
 0x2e8   : > { %1133 = vst [vmem:[%s2056_s5 + $0x8] sm:$0xff] %v1117_v36  ;;  %v1476_v39 = vpop.f32.mrb[4].mxu1 }
 0x2e9   : > { %v1106_v43 = vmul.f32 %v1567_v38, %v1476_v39  ;;  %v1037_v44 = vpop.f32.mrb[5].mxu1 }
 0x2ea   : > { %v1104_v48 = vmul.f32 %v1569_v41, %v1037_v44  ;;  %v1477_v49 = vpop.f32.mrb[6].mxu1 }
 0x2eb   : > { %v1122_v53 = vadd.f32 %v1106_v43, %v1090_v40  ;;  %v1107_v54 = vmul.f32 %v1571_v46, %v1477_v49  ;;  %v1040_v55 = vpop.f32.mrb[7].mxu1 }
 0x2ec   : > { %v1120_v58 = vadd.f32 %v1104_v48, %v1088_v45  ;;  %v1105_v59 = vmul.f32 %v1573_v51, %v1040_v55  ;;  %v1155_v41 = vld [vmem:[%s2056_s5 + $0x10] sm:$0xff] (%p1148_p6) }
 0x2ed   : > { %1138 = vst [vmem:[%s2056_s5 + $0x30] sm:$0xff] %v1122_v53  ;;  %v1123_v61 = vadd.f32 %v1107_v54, %v1091_v50  ;;  %v1153_v39 = vld [vmem:[%s2056_s5] sm:$0xff] (%p1148_p6)  ;;  %v1171_v44 = vmax.f32 (%p1148_p6), %v1155_v41, 0.0 }
 0x2ee   : > { %1136 = vst [vmem:[%s2056_s5 + $0x20] sm:$0xff] %v1120_v58  ;;  %v1121_v62 = vadd.f32 %v1105_v59, %v1089_v56  ;;  %v1169_v42 = vmax.f32 (%p1148_p6), %v1153_v39, 0.0  ;;  %v1156_v45 = vld [vmem:[%s2056_s5 + $0x18] sm:$0xff] (%p1148_p6) }
 0x2ef   : > { %1139 = vst [vmem:[%s2056_s5 + $0x38] sm:$0xff] %v1123_v61  ;;  %v1154_v40 = vld [vmem:[%s2056_s5 + $0x8] sm:$0xff] (%p1148_p6)  ;;  %v1172_v48 = vmax.f32 (%p1148_p6), %v1156_v45, 0.0  ;;  %1187 = vst [vmem:[%s2056_s5 + $0x10] sm:$0xff] (%p1148_p6), %v1171_v44 }
 0x2f0   : > { %1137 = vst [vmem:[%s2056_s5 + $0x28] sm:$0xff] %v1121_v62  ;;  %v1480_v0 = vpop.f32.mrb[8].mxu1  ;;  %v1170_v43 = vmax.f32 (%p1148_p6), %v1154_v40, 0.0  ;;  %1185 = vst [vmem:[%s2056_s5] sm:$0xff] (%p1148_p6), %v1169_v42 }
 0x2f1   : > { %v1110_v3 = vmul.f32 %v1575_v63, %v1480_v0  ;;  %v1053_v4 = vpop.f32.mrb[9].mxu1  ;;  %1188 = vst [vmem:[%s2056_s5 + $0x18] sm:$0xff] (%p1148_p6), %v1172_v48 }
 0x2f2   : > { %v1108_v7 = vmul.f32 %v1577_v2, %v1053_v4  ;;  %v1481_v8 = vpop.f32.mrb[10].mxu1  ;;  %1186 = vst [vmem:[%s2056_s5 + $0x8] sm:$0xff] (%p1148_p6), %v1170_v43 }
 0x2f3   : > { %v1126_v11 = vadd.f32 %v1110_v3, %v1094_v1  ;;  %v1111_v12 = vmul.f32 %v1579_v6, %v1481_v8  ;;  %v1056_v13 = vpop.f32.mrb[11].mxu1 }
 0x2f4   : > { %v1124_v15 = vadd.f32 %v1108_v7, %v1092_v5  ;;  %v1109_v16 = vmul.f32 %v1581_v10, %v1056_v13  ;;  %v1159_v51 = vld [vmem:[%s2056_s5 + $0x30] sm:$0xff] (%p1148_p6) }
 0x2f5   : > { %1142 = vst [vmem:[%s2056_s5 + $0x50] sm:$0xff] %v1126_v11  ;;  %v1127_v17 = vadd.f32 %v1111_v12, %v1095_v9  ;;  %v1157_v46 = vld [vmem:[%s2056_s5 + $0x20] sm:$0xff] (%p1148_p6)  ;;  %v1175_v54 = vmax.f32 (%p1148_p6), %v1159_v51, 0.0 }
 0x2f6   : > { %1140 = vst [vmem:[%s2056_s5 + $0x40] sm:$0xff] %v1124_v15  ;;  %v1125_v18 = vadd.f32 %v1109_v16, %v1093_v14  ;;  %v1173_v49 = vmax.f32 (%p1148_p6), %v1157_v46, 0.0  ;;  %v1160_v52 = vld [vmem:[%s2056_s5 + $0x38] sm:$0xff] (%p1148_p6) }
 0x2f7   : > { %1143 = vst [vmem:[%s2056_s5 + $0x58] sm:$0xff] %v1127_v17  ;;  %v1158_v47 = vld [vmem:[%s2056_s5 + $0x28] sm:$0xff] (%p1148_p6)  ;;  %v1176_v55 = vmax.f32 (%p1148_p6), %v1160_v52, 0.0  ;;  %1191 = vst [vmem:[%s2056_s5 + $0x30] sm:$0xff] (%p1148_p6), %v1175_v54 }
 0x2f8   : > { %1141 = vst [vmem:[%s2056_s5 + $0x48] sm:$0xff] %v1125_v18  ;;  %v1484_v20 = vpop.f32.mrb[12].mxu1  ;;  %v1174_v50 = vmax.f32 (%p1148_p6), %v1158_v47, 0.0  ;;  %1189 = vst [vmem:[%s2056_s5 + $0x20] sm:$0xff] (%p1148_p6), %v1173_v49 }
 0x2f9   : > { %v1114_v23 = vmul.f32 %v1583_v19, %v1484_v20  ;;  %v1069_v24 = vpop.f32.mrb[13].mxu1  ;;  %1192 = vst [vmem:[%s2056_s5 + $0x38] sm:$0xff] (%p1148_p6), %v1176_v55 }
 0x2fa   : > { %v1112_v27 = vmul.f32 %v1585_v22, %v1069_v24  ;;  %v1485_v28 = vpop.f32.mrb[14].mxu1  ;;  %1152 = sbr.rel (!%p1148_p6) target bundleno = 779 (0x30b), region = 56  ;;  %1190 = vst [vmem:[%s2056_s5 + $0x28] sm:$0xff] (%p1148_p6), %v1174_v50 }
 0x2fb   : > { %v1130_v31 = vadd.f32 %v1114_v23, %v1098_v21  ;;  %v1115_v32 = vmul.f32 %v1587_v26, %v1485_v28  ;;  %v1072_v33 = vpop.f32.mrb[15].mxu1 }
 0x2fc   : > { %v1128_v35 = vadd.f32 %v1112_v27, %v1096_v25  ;;  %v1113_v36 = vmul.f32 %v1589_v30, %v1072_v33  ;;  %v1163_v58 = vld [vmem:[%s2056_s5 + $0x50] sm:$0xff] (%p1148_p6) }
 0x2fd   : > { %1146 = vst [vmem:[%s2056_s5 + $0x70] sm:$0xff] %v1130_v31  ;;  %v1131_v37 = vadd.f32 %v1115_v32, %v1099_v29  ;;  %v1161_v53 = vld [vmem:[%s2056_s5 + $0x40] sm:$0xff] (%p1148_p6)  ;;  %v1179_v61 = vmax.f32 (%p1148_p6), %v1163_v58, 0.0 }
 0x2fe   : > { %1144 = vst [vmem:[%s2056_s5 + $0x60] sm:$0xff] %v1128_v35  ;;  %v1129_v38 = vadd.f32 %v1113_v36, %v1097_v34  ;;  %v1177_v56 = vmax.f32 (%p1148_p6), %v1161_v53, 0.0  ;;  %v1164_v59 = vld [vmem:[%s2056_s5 + $0x58] sm:$0xff] (%p1148_p6) }
 0x2ff   : > { %1147 = vst [vmem:[%s2056_s5 + $0x78] sm:$0xff] %v1131_v37  ;;  %v1162_v57 = vld [vmem:[%s2056_s5 + $0x48] sm:$0xff] (%p1148_p6)  ;;  %v1180_v62 = vmax.f32 (%p1148_p6), %v1164_v59, 0.0  ;;  %1195 = vst [vmem:[%s2056_s5 + $0x50] sm:$0xff] (%p1148_p6), %v1179_v61 }
 0x300   : > { %1145 = vst [vmem:[%s2056_s5 + $0x68] sm:$0xff] %v1129_v38  ;;  %v1178_v60 = vmax.f32 (%p1148_p6), %v1162_v57, 0.0  ;;  %1193 = vst [vmem:[%s2056_s5 + $0x40] sm:$0xff] (%p1148_p6), %v1177_v56 }
 0x301   : > { %1196 = vst [vmem:[%s2056_s5 + $0x58] sm:$0xff] %v1180_v62 }
 0x302   : > { %1194 = vst [vmem:[%s2056_s5 + $0x48] sm:$0xff] %v1178_v60 }
 0x304   : > { %v1167_v1 = vld [vmem:[%s2056_s5 + $0x70] sm:$0xff] }
 0x305   : > { %v1165_v63 = vld [vmem:[%s2056_s5 + $0x60] sm:$0xff]  ;;  %v1183_v4 = vmax.f32 %v1167_v1, 0.0 }
 0x306   : > { %v1181_v2 = vmax.f32 %v1165_v63, 0.0  ;;  %v1168_v5 = vld [vmem:[%s2056_s5 + $0x78] sm:$0xff] }
 0x307   : > { %v1166_v0 = vld [vmem:[%s2056_s5 + $0x68] sm:$0xff]  ;;  %v1184_v6 = vmax.f32 %v1168_v5, 0.0  ;;  %1199 = vst [vmem:[%s2056_s5 + $0x70] sm:$0xff] %v1183_v4 }
 0x308   : > { %v1182_v3 = vmax.f32 %v1166_v0, 0.0  ;;  %1197 = vst [vmem:[%s2056_s5 + $0x60] sm:$0xff] %v1181_v2 }
 0x309   : > { %1200 = vst [vmem:[%s2056_s5 + $0x78] sm:$0xff] %v1184_v6 }
 0x30a   : > { %1198 = vst [vmem:[%s2056_s5 + $0x68] sm:$0xff] %v1182_v3 }
 0x30b PF: > { %s15_s20 = sadd.s32 1, %s1612_s20   ;;  %s2057_s18 = smov %s1608_s19 }
 0x30c   : > { %p12_p7 = scmp.ge.s32.totalorder %s15_s20, 5   ;;  %s2058_s19 = smov %s2060_s21 }
 0x30e   :  { %14 = sbr.rel (!%p12_p7) target bundleno = 2 (0x2), region = 91 }

</bundles_post_ra>
